<compile_context>
chip_gen: v7x
topology: tpu7x:2x2x1
jax: 0.10.0
libtpu: 0.0.40
codegen_flags: <defaults>
</compile_context>

<pallas_src>
import functools

import numpy as np
import jax
import jax.numpy as jnp
from jax.experimental import pallas as pl
from jax.experimental.pallas import tpu as pltpu

# ----------------------------- configuration --------------------------------
B = 2            # batch
S = 10           # sequence length (forced by .repeat(1, 10, 1) in forward)
VOCAB = 32       # seq_embedding.vocab_len
EMB_DIM = 16     # seq_embedding.embedding_dim
SEQ_EMB_HID = 32
SEQ_EMB_OUT = 32
IN_EMB_DIM = 16  # seq_input.input_embedding_dim
SEQ_IN_HID = 32
SEQ_IN_OUT = 32  # == file_embedding.embedding_input_dim
FILE_BITS = 16   # file_embedding.bits
FILE_HID = 32
PAD_IDX = 0
MAX_POS = 16

LANES = 128
VMEM = pl.BlockSpec(memory_space=pltpu.MemorySpace.VMEM)

# --------------------------- static packed layout ----------------------------
# Every constant sub-tensor lives at a sublane offset that is a multiple of 8
# inside one (TOTAL_ROWS, 128) f32 slab, so in-kernel slices are tile-aligned.
_LAYOUT_SHAPES = [
    ("seg",   (B, B * S)),                             # block-diag sum matrix
    ("rep",   (B * S, B)),                             # broadcast (repeat) matrix
    ("emb",   (VOCAB + MAX_POS, 2 * EMB_DIM)),         # [se_tok;se_pos | si_tok;si_pos]
    ("w1",    (2 * EMB_DIM, SEQ_EMB_HID + SEQ_IN_HID)),# block-diag [se_w1, si_wa]
    ("b1",    (1, SEQ_EMB_HID + SEQ_IN_HID)),          # [se_b1 | si_b1]
    ("w2si",  (SEQ_EMB_HID, SEQ_IN_HID)),              # se_w2 @ si_wb (folded)
    ("bctx",  (1, SEQ_IN_HID)),                        # S * se_b2 @ si_wb (folded)
    ("siw2",  (SEQ_IN_HID, SEQ_IN_OUT)),
    ("sib2",  (1, SEQ_IN_OUT)),                        # S * si_b2 (prescaled)
    ("fewx",  (SEQ_IN_OUT, FILE_HID)),
    ("fewt",  (1, FILE_HID)),
    ("feb1",  (1, FILE_HID)),
    ("few2",  (FILE_HID, FILE_HID)),
    ("feb2",  (1, FILE_HID)),
    ("whead", (FILE_HID, FILE_BITS + 1)),              # [bce | mse] head weight
    ("bhead", (1, FILE_BITS + 1)),                     # [bce | mse] head bias
]


def _compute_layout():
    offsets, cur = {}, 0
    for name, (r, c) in _LAYOUT_SHAPES:
        offsets[name] = (cur, (r, c))
        cur += -(-r // 8) * 8                          # pad rows to multiple of 8
    return offsets, cur


_OFFSETS, _TOTAL_ROWS = _compute_layout()

# Static segment-sum matrix (B, B*S) and its transpose (B*S, B).
_SEG_NP = np.kron(np.eye(B, dtype=np.float32), np.ones((1, S), dtype=np.float32))
_REP_NP = np.ascontiguousarray(_SEG_NP.T)

# Advisory cost hint (tiny, latency-bound kernel).
_FLOPS = 2 * (B * S) * ((VOCAB + MAX_POS) * 2 * EMB_DIM            # one-hot @ table
                        + 2 * EMB_DIM * (SEQ_EMB_HID + SEQ_IN_HID) # block-diag L1
                        + 2 * B * SEQ_IN_HID)                      # seg/rep matmuls
_FLOPS += 2 * B * (SEQ_EMB_HID * SEQ_IN_HID + SEQ_IN_HID * SEQ_IN_OUT
                   + SEQ_IN_OUT * FILE_HID + FILE_HID * FILE_HID
                   + FILE_HID * (FILE_BITS + 1))
_BYTES = (_TOTAL_ROWS * LANES * 4 + B * S * 2 * 4 + B * 4
          + B * (FILE_BITS + 1) * 4)


# -------------------------------- fused kernel -------------------------------
def fused_kernel(ids_ref, t_ref, p_ref, out_ref):
    f32 = jnp.float32

    def P(name):
        off, (r, c) = _OFFSETS[name]
        return p_ref[off:off + r, :c]                  # static, sublane-aligned view

    # Combined one-hot [tok | pos] via a single iota + select (-> MXU gather).
    ids = ids_ref[...]                                 # (B*S, 2) int32
    tok = ids[:, 0:1]
    pos = ids[:, 1:2] + VOCAB
    col = jax.lax.broadcasted_iota(jnp.int32, (B * S, VOCAB + MAX_POS), 1)
    oh = (col == jnp.where(col < VOCAB, tok, pos)).astype(f32)        # (B*S, 48)

    seg = P("seg")                                     # (B, B*S)
    rep = P("rep")                                     # (B*S, B)

    # One matmul gives both se_emb (lanes 0:16) and si_emb (lanes 16:32).
    emb = jnp.dot(oh, P("emb"), preferred_element_type=f32)           # (B*S, 32)
    # One block-diagonal matmul gives both first-layer pre-activations.
    h_all = (jnp.dot(emb, P("w1"), preferred_element_type=f32)
             + P("b1"))                                               # (B*S, 64)

    # ---- SeqEmbedding branch, sum over S folded before the 2nd linear ------
    se_h = jnp.maximum(h_all[:, :SEQ_EMB_HID], 0.0)                   # (B*S, 32)
    se_hs = jnp.dot(seg, se_h, preferred_element_type=f32)            # (B, 32)
    # ctx @ si_wb folded offline into w2si / bctx.
    ctx_h = (jnp.dot(se_hs, P("w2si"), preferred_element_type=f32)
             + P("bctx"))                                             # (B, 32)
    ctx_rep = jnp.dot(rep, ctx_h, preferred_element_type=f32)         # (B*S, 32)

    # ---- SeqInput branch ----------------------------------------------------
    si_h = jnp.maximum(h_all[:, SEQ_EMB_HID:SEQ_EMB_HID + SEQ_IN_HID]
                       + ctx_rep, 0.0)                                # (B*S, 32)
    si_hs = jnp.dot(seg, si_h, preferred_element_type=f32)            # (B, 32)
    x = (jnp.dot(si_hs, P("siw2"), preferred_element_type=f32)
         + P("sib2"))                                                 # (B, 32)

    # ---- FileEmbeddingModel: [x ++ t] -> MLP -> merged (bce, mse) head ------
    h = jnp.maximum(jnp.dot(x, P("fewx"), preferred_element_type=f32)
                    + t_ref[...] * P("fewt") + P("feb1"), 0.0)        # (B, 32)
    h = jnp.maximum(jnp.dot(h, P("few2"), preferred_element_type=f32)
                    + P("feb2"), 0.0)
    out_ref[...] = (jnp.dot(h, P("whead"), preferred_element_type=f32)
                    + P("bhead"))                                     # (B, BITS+1)


# ------------------------------ parameters -----------------------------------
def init_params(key):
    ks = jax.random.split(key, 16)

    def w(k, shape, scale=0.1):
        return scale * jax.random.normal(k, shape, dtype=jnp.float32)

    p = {}
    # SeqEmbedding
    p["se_tok_emb"] = w(ks[0], (VOCAB, EMB_DIM)).at[PAD_IDX].set(0.0)   # padding_idx row = 0
    p["se_pos_emb"] = w(ks[1], (MAX_POS, EMB_DIM))
    p["se_w1"] = w(ks[2], (EMB_DIM, SEQ_EMB_HID))
    p["se_b1"] = jnp.zeros((1, SEQ_EMB_HID), jnp.float32)
    p["se_w2"] = w(ks[3], (SEQ_EMB_HID, SEQ_EMB_OUT))
    p["se_b2"] = jnp.zeros((1, SEQ_EMB_OUT), jnp.float32)
    # SeqInput
    p["si_tok_emb"] = w(ks[4], (VOCAB, IN_EMB_DIM)).at[PAD_IDX].set(0.0)
    p["si_pos_emb"] = w(ks[5], (MAX_POS, IN_EMB_DIM))
    p["si_wa"] = w(ks[6], (IN_EMB_DIM, SEQ_IN_HID))          # concat-Linear, emb part
    p["si_wb"] = w(ks[7], (SEQ_EMB_OUT, SEQ_IN_HID))         # concat-Linear, ctx part
    p["si_b1"] = jnp.zeros((1, SEQ_IN_HID), jnp.float32)
    p["si_w2"] = w(ks[8], (SEQ_IN_HID, SEQ_IN_OUT))
    p["si_b2"] = jnp.zeros((1, SEQ_IN_OUT), jnp.float32)
    # FileEmbeddingModel
    p["fe_wx"] = w(ks[9], (SEQ_IN_OUT, FILE_HID))            # concat-Linear, x part
    p["fe_wt"] = w(ks[10], (1, FILE_HID))                    # concat-Linear, t part
    p["fe_b1"] = jnp.zeros((1, FILE_HID), jnp.float32)
    p["fe_w2"] = w(ks[11], (FILE_HID, FILE_HID))
    p["fe_b2"] = jnp.zeros((1, FILE_HID), jnp.float32)
    p["fe_wbce"] = w(ks[12], (FILE_HID, FILE_BITS))
    p["fe_bbce"] = jnp.zeros((1, FILE_BITS), jnp.float32)
    p["fe_wmse"] = w(ks[13], (FILE_HID, 1))
    p["fe_bmse"] = jnp.zeros((1, 1), jnp.float32)
    return p


def prepare_operands(params):
    """One-time host-side preprocessing: fold, merge and pack all constants."""
    p = {k: np.asarray(jax.device_get(v), np.float32) for k, v in params.items()}

    tensors = {}
    tensors["seg"] = _SEG_NP
    tensors["rep"] = _REP_NP

    # Merged embedding table: rows = [tok (32) ; pos (16)], lanes = [se | si].
    emb = np.zeros((VOCAB + MAX_POS, 2 * EMB_DIM), np.float32)
    emb[:VOCAB, :EMB_DIM] = p["se_tok_emb"]
    emb[:VOCAB, EMB_DIM:] = p["si_tok_emb"]
    emb[VOCAB:, :EMB_DIM] = p["se_pos_emb"]
    emb[VOCAB:, EMB_DIM:] = p["si_pos_emb"]
    tensors["emb"] = emb

    # Block-diagonal first-layer weight + merged bias.
    w1 = np.zeros((2 * EMB_DIM, SEQ_EMB_HID + SEQ_IN_HID), np.float32)
    w1[:EMB_DIM, :SEQ_EMB_HID] = p["se_w1"]
    w1[EMB_DIM:, SEQ_EMB_HID:] = p["si_wa"]
    tensors["w1"] = w1
    tensors["b1"] = np.concatenate([p["se_b1"], p["si_b1"]], axis=1)

    # Fold ctx @ si_wb offline (ctx is consumed by nothing else).
    tensors["w2si"] = p["se_w2"] @ p["si_wb"]
    tensors["bctx"] = float(S) * (p["se_b2"] @ p["si_wb"])

    tensors["siw2"] = p["si_w2"]
    tensors["sib2"] = float(S) * p["si_b2"]

    tensors["fewx"] = p["fe_wx"]
    tensors["fewt"] = p["fe_wt"]
    tensors["feb1"] = p["fe_b1"]
    tensors["few2"] = p["fe_w2"]
    tensors["feb2"] = p["fe_b2"]
    tensors["whead"] = np.concatenate([p["fe_wbce"], p["fe_wmse"]], axis=1)
    tensors["bhead"] = np.concatenate([p["fe_bbce"], p["fe_bmse"]], axis=1)

    buf = np.zeros((_TOTAL_ROWS, LANES), np.float32)
    for name, arr in tensors.items():
        off, (r, c) = _OFFSETS[name]
        assert arr.shape == (r, c), (name, arr.shape, (r, c))
        buf[off:off + r, :c] = arr
    return {"packed": jnp.asarray(buf)}


# ------------------------------ forward pass ---------------------------------
def seq_encoding_seq_pred_forward(ops, t_seq, seq_indices, t):
    """t_seq: (B, S) int32, seq_indices: (B, S) int32, t: (B, 1) float32."""
    ids = jnp.concatenate(
        [t_seq.reshape(B * S, 1), seq_indices.reshape(B * S, 1)],
        axis=1).astype(jnp.int32)                                     # (B*S, 2)

    head = pl.pallas_call(
        fused_kernel,
        out_shape=jax.ShapeDtypeStruct((B, FILE_BITS + 1), jnp.float32),
        in_specs=[VMEM, VMEM, VMEM],
        out_specs=VMEM,
        cost_estimate=pl.CostEstimate(
            flops=_FLOPS, transcendentals=0, bytes_accessed=_BYTES),
    )(ids, t, ops["packed"])

    # Split merged head in the wrapper (free at XLA level).
    return head[:, :FILE_BITS], head[:, FILE_BITS:FILE_BITS + 1]


# --------------------------------- main ---------------------------------------
if __name__ == "__main__":
    key = jax.random.PRNGKey(0)
    k_seq, k_t, k_params = jax.random.split(key, 3)

    t_seq = jax.random.randint(k_seq, (B, S), 0, VOCAB, dtype=jnp.int32)
    seq_indices = jnp.tile(jnp.arange(S, dtype=jnp.int32)[None, :], (B, 1))
    t = jax.random.uniform(k_t, (B, 1), dtype=jnp.float32)

    params = init_params(k_params)
    ops = prepare_operands(params)          # once, outside the per-call path

    fwd = jax.jit(functools.partial(seq_encoding_seq_pred_forward, ops))
    bce_out, mse_out = fwd(t_seq, seq_indices, t)
    jax.block_until_ready((bce_out, mse_out))

    assert bce_out.shape == (B, FILE_BITS) and bce_out.dtype == jnp.float32
    assert mse_out.shape == (B, 1) and mse_out.dtype == jnp.float32
    assert bool(jnp.all(jnp.isfinite(bce_out))) and bool(jnp.all(jnp.isfinite(mse_out)))
    print("KERNEL_OK")
</pallas_src>

<mosaic_0001>
module attributes {stable_mosaic.version = 11 : i64} {
  func.func @fused_kernel(%arg0: memref<20x2xi32, #tpu.memory_space<vmem>>, %arg1: memref<2x1xf32, #tpu.memory_space<vmem>>, %arg2: memref<328x128xf32, #tpu.memory_space<vmem>>, %arg3: memref<2x17xf32, #tpu.memory_space<vmem>>) attributes {dimension_semantics = [], scalar_prefetch = 0 : i64, scratch_operands = 0 : i64, tpu.core_type = #tpu.core_type<tc>} {
    %c0 = arith.constant 0 : index
    %c0_0 = arith.constant 0 : index
    %0 = vector.load %arg0[%c0, %c0_0] : memref<20x2xi32, #tpu.memory_space<vmem>>, vector<20x2xi32>
    %1 = vector.extract_strided_slice %0 {offsets = [0, 0], sizes = [20, 1], strides = [1, 1]} : vector<20x2xi32> to vector<20x1xi32>
    %2 = vector.extract_strided_slice %0 {offsets = [0, 1], sizes = [20, 1], strides = [1, 1]} : vector<20x2xi32> to vector<20x1xi32>
    %c32_i32 = arith.constant 32 : i32
    %3 = vector.broadcast %c32_i32 : i32 to vector<20x1xi32>
    %4 = arith.addi %2, %3 : vector<20x1xi32>
    %5 = tpu.iota {dimensions = array<i32: 1>} : vector<20x48xi32>
    %c32_i32_1 = arith.constant 32 : i32
    %6 = vector.broadcast %c32_i32_1 : i32 to vector<20x48xi32>
    %7 = arith.cmpi slt, %5, %6 : vector<20x48xi32>
    %8 = vector.shape_cast %1 : vector<20x1xi32> to vector<20x1xi32>
    %9 = vector.broadcast %8 : vector<20x1xi32> to vector<20x48xi32>
    %10 = vector.shape_cast %4 : vector<20x1xi32> to vector<20x1xi32>
    %11 = vector.broadcast %10 : vector<20x1xi32> to vector<20x48xi32>
    %12 = arith.select %7, %9, %11 : vector<20x48xi1>, vector<20x48xi32>
    %13 = arith.cmpi eq, %5, %12 : vector<20x48xi32>
    %14 = arith.extui %13 : vector<20x48xi1> to vector<20x48xi32>
    %15 = arith.sitofp %14 : vector<20x48xi32> to vector<20x48xf32>
    %c0_2 = arith.constant 0 : index
    %c0_3 = arith.constant 0 : index
    %16 = vector.load %arg2[%c0_2, %c0_3] : memref<328x128xf32, #tpu.memory_space<vmem>>, vector<2x20xf32>
    %c8 = arith.constant 8 : index
    %c0_4 = arith.constant 0 : index
    %17 = vector.load %arg2[%c8, %c0_4] : memref<328x128xf32, #tpu.memory_space<vmem>>, vector<20x2xf32>
    %c32 = arith.constant 32 : index
    %c0_5 = arith.constant 0 : index
    %18 = vector.load %arg2[%c32, %c0_5] : memref<328x128xf32, #tpu.memory_space<vmem>>, vector<48x32xf32>
    %cst = arith.constant dense<0.000000e+00> : vector<20x32xf32>
    %19 = tpu.matmul %15, %18, %cst {dimension_numbers = #tpu.dot_dimension_numbers<[1], [0], [0], [1], [0, 0, 1, 1], [], []>} : vector<20x48xf32>, vector<48x32xf32>, vector<20x32xf32> -> vector<20x32xf32>
    %c80 = arith.constant 80 : index
    %c0_6 = arith.constant 0 : index
    %20 = vector.load %arg2[%c80, %c0_6] : memref<328x128xf32, #tpu.memory_space<vmem>>, vector<32x64xf32>
    %cst_7 = arith.constant dense<0.000000e+00> : vector<20x64xf32>
    %21 = tpu.matmul %19, %20, %cst_7 {dimension_numbers = #tpu.dot_dimension_numbers<[1], [0], [0], [1], [0, 0, 1, 1], [], []>} : vector<20x32xf32>, vector<32x64xf32>, vector<20x64xf32> -> vector<20x64xf32>
    %c112 = arith.constant 112 : index
    %c0_8 = arith.constant 0 : index
    %22 = vector.load %arg2[%c112, %c0_8] : memref<328x128xf32, #tpu.memory_space<vmem>>, vector<1x64xf32>
    %23 = vector.broadcast %22 : vector<1x64xf32> to vector<20x64xf32>
    %24 = arith.addf %21, %23 : vector<20x64xf32>
    %25 = vector.extract_strided_slice %24 {offsets = [0, 0], sizes = [20, 32], strides = [1, 1]} : vector<20x64xf32> to vector<20x32xf32>
    %cst_9 = arith.constant 0.000000e+00 : f32
    %26 = vector.broadcast %cst_9 : f32 to vector<20x32xf32>
    %27 = arith.maximumf %25, %26 : vector<20x32xf32>
    %cst_10 = arith.constant dense<0.000000e+00> : vector<2x32xf32>
    %28 = tpu.matmul %16, %27, %cst_10 {dimension_numbers = #tpu.dot_dimension_numbers<[1], [0], [0], [1], [0, 0, 1, 1], [], []>} : vector<2x20xf32>, vector<20x32xf32>, vector<2x32xf32> -> vector<2x32xf32>
    %c120 = arith.constant 120 : index
    %c0_11 = arith.constant 0 : index
    %29 = vector.load %arg2[%c120, %c0_11] : memref<328x128xf32, #tpu.memory_space<vmem>>, vector<32x32xf32>
    %cst_12 = arith.constant dense<0.000000e+00> : vector<2x32xf32>
    %30 = tpu.matmul %28, %29, %cst_12 {dimension_numbers = #tpu.dot_dimension_numbers<[1], [0], [0], [1], [0, 0, 1, 1], [], []>} : vector<2x32xf32>, vector<32x32xf32>, vector<2x32xf32> -> vector<2x32xf32>
    %c152 = arith.constant 152 : index
    %c0_13 = arith.constant 0 : index
    %31 = vector.load %arg2[%c152, %c0_13] : memref<328x128xf32, #tpu.memory_space<vmem>>, vector<1x32xf32>
    %32 = vector.broadcast %31 : vector<1x32xf32> to vector<2x32xf32>
    %33 = arith.addf %30, %32 : vector<2x32xf32>
    %cst_14 = arith.constant dense<0.000000e+00> : vector<20x32xf32>
    %34 = tpu.matmul %17, %33, %cst_14 {dimension_numbers = #tpu.dot_dimension_numbers<[1], [0], [0], [1], [0, 0, 1, 1], [], []>} : vector<20x2xf32>, vector<2x32xf32>, vector<20x32xf32> -> vector<20x32xf32>
    %35 = vector.extract_strided_slice %24 {offsets = [0, 32], sizes = [20, 32], strides = [1, 1]} : vector<20x64xf32> to vector<20x32xf32>
    %36 = arith.addf %35, %34 : vector<20x32xf32>
    %cst_15 = arith.constant 0.000000e+00 : f32
    %37 = vector.broadcast %cst_15 : f32 to vector<20x32xf32>
    %38 = arith.maximumf %36, %37 : vector<20x32xf32>
    %cst_16 = arith.constant dense<0.000000e+00> : vector<2x32xf32>
    %39 = tpu.matmul %16, %38, %cst_16 {dimension_numbers = #tpu.dot_dimension_numbers<[1], [0], [0], [1], [0, 0, 1, 1], [], []>} : vector<2x20xf32>, vector<20x32xf32>, vector<2x32xf32> -> vector<2x32xf32>
    %c160 = arith.constant 160 : index
    %c0_17 = arith.constant 0 : index
    %40 = vector.load %arg2[%c160, %c0_17] : memref<328x128xf32, #tpu.memory_space<vmem>>, vector<32x32xf32>
    %cst_18 = arith.constant dense<0.000000e+00> : vector<2x32xf32>
    %41 = tpu.matmul %39, %40, %cst_18 {dimension_numbers = #tpu.dot_dimension_numbers<[1], [0], [0], [1], [0, 0, 1, 1], [], []>} : vector<2x32xf32>, vector<32x32xf32>, vector<2x32xf32> -> vector<2x32xf32>
    %c192 = arith.constant 192 : index
    %c0_19 = arith.constant 0 : index
    %42 = vector.load %arg2[%c192, %c0_19] : memref<328x128xf32, #tpu.memory_space<vmem>>, vector<1x32xf32>
    %43 = vector.broadcast %42 : vector<1x32xf32> to vector<2x32xf32>
    %44 = arith.addf %41, %43 : vector<2x32xf32>
    %c200 = arith.constant 200 : index
    %c0_20 = arith.constant 0 : index
    %45 = vector.load %arg2[%c200, %c0_20] : memref<328x128xf32, #tpu.memory_space<vmem>>, vector<32x32xf32>
    %cst_21 = arith.constant dense<0.000000e+00> : vector<2x32xf32>
    %46 = tpu.matmul %44, %45, %cst_21 {dimension_numbers = #tpu.dot_dimension_numbers<[1], [0], [0], [1], [0, 0, 1, 1], [], []>} : vector<2x32xf32>, vector<32x32xf32>, vector<2x32xf32> -> vector<2x32xf32>
    %c0_22 = arith.constant 0 : index
    %c0_23 = arith.constant 0 : index
    %47 = vector.load %arg1[%c0_22, %c0_23] : memref<2x1xf32, #tpu.memory_space<vmem>>, vector<2x1xf32>
    %c232 = arith.constant 232 : index
    %c0_24 = arith.constant 0 : index
    %48 = vector.load %arg2[%c232, %c0_24] : memref<328x128xf32, #tpu.memory_space<vmem>>, vector<1x32xf32>
    %49 = vector.broadcast %47 : vector<2x1xf32> to vector<2x32xf32>
    %50 = vector.broadcast %48 : vector<1x32xf32> to vector<2x32xf32>
    %51 = arith.mulf %49, %50 : vector<2x32xf32>
    %52 = arith.addf %46, %51 : vector<2x32xf32>
    %c240 = arith.constant 240 : index
    %c0_25 = arith.constant 0 : index
    %53 = vector.load %arg2[%c240, %c0_25] : memref<328x128xf32, #tpu.memory_space<vmem>>, vector<1x32xf32>
    %54 = vector.broadcast %53 : vector<1x32xf32> to vector<2x32xf32>
    %55 = arith.addf %52, %54 : vector<2x32xf32>
    %cst_26 = arith.constant 0.000000e+00 : f32
    %56 = vector.broadcast %cst_26 : f32 to vector<2x32xf32>
    %57 = arith.maximumf %55, %56 : vector<2x32xf32>
    %c248 = arith.constant 248 : index
    %c0_27 = arith.constant 0 : index
    %58 = vector.load %arg2[%c248, %c0_27] : memref<328x128xf32, #tpu.memory_space<vmem>>, vector<32x32xf32>
    %cst_28 = arith.constant dense<0.000000e+00> : vector<2x32xf32>
    %59 = tpu.matmul %57, %58, %cst_28 {dimension_numbers = #tpu.dot_dimension_numbers<[1], [0], [0], [1], [0, 0, 1, 1], [], []>} : vector<2x32xf32>, vector<32x32xf32>, vector<2x32xf32> -> vector<2x32xf32>
    %c280 = arith.constant 280 : index
    %c0_29 = arith.constant 0 : index
    %60 = vector.load %arg2[%c280, %c0_29] : memref<328x128xf32, #tpu.memory_space<vmem>>, vector<1x32xf32>
    %61 = vector.broadcast %60 : vector<1x32xf32> to vector<2x32xf32>
    %62 = arith.addf %59, %61 : vector<2x32xf32>
    %cst_30 = arith.constant 0.000000e+00 : f32
    %63 = vector.broadcast %cst_30 : f32 to vector<2x32xf32>
    %64 = arith.maximumf %62, %63 : vector<2x32xf32>
    %c288 = arith.constant 288 : index
    %c0_31 = arith.constant 0 : index
    %65 = vector.load %arg2[%c288, %c0_31] : memref<328x128xf32, #tpu.memory_space<vmem>>, vector<32x17xf32>
    %cst_32 = arith.constant dense<0.000000e+00> : vector<2x17xf32>
    %66 = tpu.matmul %64, %65, %cst_32 {dimension_numbers = #tpu.dot_dimension_numbers<[1], [0], [0], [1], [0, 0, 1, 1], [], []>} : vector<2x32xf32>, vector<32x17xf32>, vector<2x17xf32> -> vector<2x17xf32>
    %c320 = arith.constant 320 : index
    %c0_33 = arith.constant 0 : index
    %67 = vector.load %arg2[%c320, %c0_33] : memref<328x128xf32, #tpu.memory_space<vmem>>, vector<1x17xf32>
    %68 = vector.broadcast %67 : vector<1x17xf32> to vector<2x17xf32>
    %69 = arith.addf %66, %68 : vector<2x17xf32>
    %c0_34 = arith.constant 0 : index
    %c0_35 = arith.constant 0 : index
    %70 = vector.load %arg3[%c0_34, %c0_35] : memref<2x17xf32, #tpu.memory_space<vmem>>, vector<2x17xf32>
    tpu.vector_store %arg3[%c0_34, %c0_35], %69 {strides = array<i32>} : memref<2x17xf32, #tpu.memory_space<vmem>>, vector<2x17xf32>,
    return
  }
}

</mosaic_0001>

<bundles_post_ra>
// kernel: seq_encoding_seq_pred_forward.1
= control target key start
LH: loop header
LB: loop body
LE: loop exit
PB: predicated region body
PF: predicated region fallthrough
CT: control target
= control target key end

     0   :  { %8 = vsyncpa [#allocation3], 0  ;;  %s1274_s12 = smov [#allocation2]   ;;  %s1402_s0 = inlined_call_operand.vmem [shape: s32[20,2], index: 0, kind: input, shape index: {}]   ;;  %s1403_s1 = inlined_call_operand.vmem [shape: f32[2,1], index: 1, kind: input, shape index: {}]   ;;  %s1404_s2 = inlined_call_operand.hbm [shape: f32[328,128], index: 2, kind: input, shape index: {}]   ;;  %s1405_s3 = inlined_call_operand.vmem [shape: f32[2,17], index: 3, kind: output, shape index: {}]  }
   0x1   :  { %s18_s13 = sshll.u32 %s1274_s12, 4  ;;  %s1250_s16 = scalar_lea.hbm %s1404_s2, 5248  ;;  %s19_s13 = int_to_ptr.vmem [resolvable:$true] %s18_s13 }
   0x2   :  { %p1251_p0 = scmp.ne.s32.totalorder %s1404_s2, %s1250_s16  ;;  %p1254_p1 = scmp.lt.u32.totalorder %s1250_s16, %s1404_s2 }
   0x4   :  { %p1256_p2 = pnand %p1254_p1, %p1251_p0 }
   0x6   :  { %1259 = shalt.err (!%p1256_p2)
}
   0x7   :  { %s1260_s21 = scalar_lea.vmem %s19_s13, 5248  ;;  %p1265_p4 = scmp.lt.s32.totalorder %s19_s13, %s19_s13 }
   0x8   :  { %p1261_p3 = scmp.ne.s32.totalorder %s19_s13, %s1260_s21  ;;  %p1266_p5 = scmp.lt.s32.totalorder %s1260_s21, %s1260_s21 }
   0xa   :  { %p1267_p6 = por %p1266_p5, %p1265_p4 }
   0xc   :  { %p1268_p7 = pnand %p1267_p6, %p1261_p3 }
   0xe   :  { %1271 = shalt.err (!%p1268_p7)
}
   0xf   :  { %s1275_s22 = smov 128   ;;  %s1276_s23 = smov 8  }
  0x10   :  { %24 = dma.hbm_to_vmem [thread:$0]  %s1404_s2, 5248, %s19_s13, [#allocation3], %s1275_s22, %s1275_s22, %s1276_s23  }
  0x11   :  { %1272 = dma.done.wait [#allocation3], 5248  }
  0x12   :  { %1273 = vsyncadd [#allocation3], 4294962048  ;;  %v1277_v0 = vmov 0   ;;  %v1278_v1 = vmov 0.0|0.0   ;;  %v29_v2 = vld [vmem:[%s1402_s0 + $0x8] sm:$0xff]  ;;  %v28_v3 = vld [vmem:[%s1402_s0] sm:$0xff]  ;;  %v34_v25 = vlaneseq }
  0x13   :  { %1241 = vset.pattern.permute.xlu1 %v1277_v0  ;;  %1239 = vset.pattern.permute.xlu0 %v1277_v0  ;;  %v71_v4 = vld [vmem:[#allocation2 + $0x20] sm:$0xff]  ;;  %v72_v5 = vld [vmem:[#allocation2 + $0x28] sm:$0xff]  ;;  %v73_v6 = vld [vmem:[#allocation2 + $0x30] sm:$0xff]  ;;  %v32_v7 = vadd.s32 32, %v29_v2  ;;  %v31_v8 = vadd.s32 32, %v28_v3  ;;  %v1279_v13 = vmov 1  }
  0x14   :  { %1178 = vmatprep.subr.bf16.mxu0 %v1278_v1  ;;  %1187 = vmatprep.subr.bf16.mxu1 %v1278_v1  ;;  %v1179_v9 = vpack.c.bf16 %v72_v5, %v71_v4  ;;  %v74_v10 = vld [vmem:[#allocation2 + $0x38] sm:$0xff]  ;;  %v30_v11 = vld [vmem:[%s1402_s0 + $0x10] sm:$0xf]  ;;  %v75_v14 = vld [vmem:[#allocation2 + $0x40] sm:$0xff]  ;;  %vm1280_vm0 = vmmov 0   ;;  %v1281_v18 = vmov 0.0  }
  0x15   :  { %41 = vperm.xlu1 %1241, %v29_v2   ;;  %38 = vperm.xlu0 %1239, %v28_v3   ;;  %v1182_v12 = vpack.c.bf16 %v74_v10, %v73_v6  ;;  %v76_v15 = vld [vmem:[#allocation2 + $0x48] sm:$0xff]  ;;  %v33_v16 = vadd.s32 32, %v30_v11  ;;  %v167_v19 = vld [vmem:[#allocation2 + $0x50] sm:$0xff]  ;;  %v168_v20 = vld [vmem:[#allocation2 + $0x58] sm:$0xff]  ;;  %v35_v26 = vand.u32 127, %v34_v25  ;;  %vm77_vm2 = vcmask 392192  }
  0x16   :  { %1180 = vmatpush3.bf16.msra.mxu0 %v1179_v9  ;;  %v1185_v17 = vpack.c.bf16 %v76_v15, %v75_v14  ;;  %1068 = vmatprep.mubr.msk.f32.mxu0 %vm1280_vm0, %v1281_v18  ;;  %v169_v21 = vld [vmem:[#allocation2 + $0x60] sm:$0xff]  ;;  %v1188_v22 = vpack.c.bf16 %v168_v20, %v167_v19  ;;  %v170_v23 = vld [vmem:[#allocation2 + $0x68] sm:$0xff]  ;;  %vm176_vm6 = vcmask 261120   ;;  %v347_v45 = vld [vmem:[#allocation2 + $0x78] sm:$0xff]  ;;  %vm273_vm7 = vcmask 1043456   ;;  %s1282_s0 = smov 32  }
  0x17   :  { %1181 = vmatprep.subr.bf16.mxu0 %v1278_v1  ;;  %1085 = vmatprep.mubr.msk.f32.mxu1 %vm1280_vm0, %v1281_v18  ;;  %v1191_v24 = vpack.c.bf16 %v170_v23, %v169_v21  ;;  %vm36_vm1 = vcmp.lt.s32.totalorder %v35_v26, 32  ;;  %v348_v46 = vld [vmem:[#allocation2 + $0x80] sm:$0xff]  ;;  %v349_v47 = vld [vmem:[#allocation2 + $0x88] sm:$0xff]  ;;  %v350_v49 = vld [vmem:[#allocation2 + $0x90] sm:$0xff]  ;;  %vm269_vm8 = vcmask 162816   ;;  %vm439_vm9 = vcmask 1041408  }
  0x18   :  { %1189 = vmatpush3.bf16.msra.mxu1 %v1188_v22  ;;  %v1197_v48 = vpack.c.bf16 %v348_v46, %v347_v45  ;;  %v1200_v50 = vpack.c.bf16 %v350_v49, %v349_v47  ;;  %v980_v51 = vld [vmem:[#allocation2 + $0x70] ss:$0 sm:$0xff]  ;;  %v1357_v2 = vld [vmem:[#allocation2] sm:$0x3]  ;;  %v986_v5 = vld [vmem:[#allocation2 + $0x98] ss:$0 sm:$0xff] }
  0x19   :  { %1242 = vset.pattern.permute.xlu1 %v1279_v13  ;;  %1240 = vset.pattern.permute.xlu0 %v1279_v13  ;;  %v68_v9 = vld [vmem:[#allocation2 + $0x8] sm:$0xff]  ;;  %vm429_vm10 = vcmask 15360   ;;  %v69_v10 = vld [vmem:[#allocation2 + $0x10] sm:$0xff]  ;;  %v624_v25 = vld [vmem:[#allocation2 + $0xa0] sm:$0xff]  ;;  %s1283_s4 = smov 96   ;;  %vm967_vm11 = vcmask 132096  }
  0x1a   :  { %50 = vperm.xlu1 %1242, %v32_v7   ;;  %47 = vperm.xlu0 %1240, %v31_v8   ;;  %v708_v45 = vld [vmem:[#allocation2 + $0xd8] sm:$0xff]  ;;  %v709_v46 = vld [vmem:[#allocation2 + $0xe0] sm:$0xff] }
  0x1b   :  { %1183 = vmatpush3.bf16.msra.mxu0 %v1182_v12  ;;  %1190 = vmatprep.subr.bf16.mxu1 %v1278_v1  ;;  %v1215_v47 = vpack.c.bf16 %v709_v46, %v708_v45  ;;  %v994_v49 = vld [vmem:[#allocation2 + $0xc0] ss:$0 sm:$0xff] }
  0x1c   :  { %1184 = vmatprep.subr.bf16.mxu0 %v1278_v1  ;;  %1192 = vmatpush3.bf16.msra.mxu1 %v1191_v24 }
  0x1d   :  { %1193 = vmatprep.subr.bf16.mxu1 %v1278_v1 }
  0x1e   :  { %1243 = vset.pattern.permute.xlu1 %v1277_v0  ;;  %53 = vperm.xlu0 %1240, %v33_v16  }
  0x1f   :  { %44 = vperm.xlu1 %1243, %v30_v11   ;;  %1186 = vmatpush3.bf16.msra.mxu0 %v1185_v17  ;;  %v70_v11 = vld [vmem:[#allocation2 + $0x18] sm:$0xf] }
  0x20   :  { %1196 = vmatprep.subr.bf16.mxu0 %v1278_v1 }
  0x22   :  { %1249 = vset.pattern.permute.xlu0 %v1277_v0 }
  0x94   :  { %v39_v27 = vpop.permute.xlu0 %38  ;;  %v42_v28 = vpop.permute.xlu1 %41 }
  0x99   :  { %v51_v29 = vpop.permute.xlu1 %50  ;;  %v48_v30 = vpop.permute.xlu0 %47 }
  0x9a   :  { %v56_v31 = vsel %vm36_vm1, %v42_v28, %v51_v29  ;;  %v55_v32 = vsel %vm36_vm1, %v39_v27, %v48_v30  ;;  %v626_v27 = vld [vmem:[#allocation2 + $0xb0] sm:$0xff]  ;;  %v627_v30 = vld [vmem:[#allocation2 + $0xb8] sm:$0xff] }
  0x9b   :  { %vm58_vm3 = vcmp.eq.s32.totalorder %v35_v26, %v55_v32  ;;  %vm59_vm4 = vcmp.eq.s32.totalorder %v35_v26, %v56_v31 }
  0x9c   :  { %v974_v33 = vsel %vm58_vm3, 1.0, %v1281_v18  ;;  %v975_v37 = vsel %vm59_vm4, 1.0, %v1281_v18 }
  0x9d   :  { %1069 = vmatmul.mubr.msk.f32.vlgmr.msra.gmra.mrb[0].mxu0 %vm77_vm2, %v974_v33  ;;  %v54_v34 = vpop.permute.xlu0 %53  ;;  %v1209_v33 = vpack.c.bf16 %v627_v30, %v626_v27 }
  0x9e   :  { %v45_v35 = vpop.permute.xlu1 %44  ;;  %1071 = vmatprep.mubr.msk.f32.mxu0 %vm1280_vm0, %v1281_v18  ;;  %1198 = vmatpush3.bf16.msra.mxu0 %v1197_v48  ;;  %v710_v48 = vld [vmem:[%s1403_s1] sm:$0x3] }
  0x9f   :  { %v57_v36 = vsel %vm36_vm1, %v45_v35, %v54_v34  ;;  %1199 = vmatprep.subr.bf16.mxu0 %v1278_v1 }
  0xa0   :  { %vm60_vm5 = vcmp.eq.s32.totalorder %v35_v26, %v57_v36  ;;  %v625_v26 = vld [vmem:[#allocation2 + $0xa8] sm:$0xff] }
  0xa1   :  { %1072 = vmatmul.mubr.msk.f32.gmra.mrb[2].mxu0 %vm77_vm2, %v975_v37  ;;  %v976_v38 = vsel %vm60_vm5, 1.0, %v1281_v18  ;;  %v1206_v29 = vpack.c.bf16 %v625_v26, %v624_v25 }
  0xa2   :  { %1074 = vmatprep.mubr.msk.f32.mxu0 %vm1280_vm0, %v1281_v18  ;;  %1201 = vmatpush3.bf16.msra.mxu0 %v1200_v50 }
  0xa3   :  { %1202 = vmatprep.subr.bf16.mxu0 %v1278_v1 }
  0xa5   :  { %1075 = vmatmul.mubr.msk.f32.gmra.mrb[4].mxu0 %vm77_vm2, %v976_v38 }
  0xa6   :  { %1111 = vmatprep.mubr.msk.f32.mxu0 %vm1280_vm0, %v1281_v18 }
 0x170   :  { %v153_v39 = vpop.f32.mrb[0].mxu0 }
 0x171   :  { %v1070_v40 = vpop.f32.mrb[1].mxu0  ;;  %1086 = vmatmul.mubr.msk.f32.vlgmr.msra.gmra.mrb[0].mxu1 %vm176_vm6, %v153_v39 }
 0x172   :  { %1088 = vmatprep.mubr.msk.f32.mxu1 %vm1280_vm0, %v1281_v18  ;;  %v706_v40 = vld [vmem:[#allocation2 + $0xc8] sm:$0xff] }
 0x174   :  { %v158_v41 = vpop.f32.mrb[2].mxu0 }
 0x175   :  { %v1073_v42 = vpop.f32.mrb[3].mxu0  ;;  %1089 = vmatmul.mubr.msk.f32.gmra.mrb[2].mxu1 %vm176_vm6, %v158_v41  ;;  %v707_v41 = vld [vmem:[#allocation2 + $0xd0] sm:$0xff] }
 0x176   :  { %1091 = vmatprep.mubr.msk.f32.mxu1 %vm1280_vm0, %v1281_v18  ;;  %v1212_v42 = vpack.c.bf16 %v707_v41, %v706_v40 }
 0x178   :  { %v163_v43 = vpop.f32.mrb[4].mxu0 }
 0x179   :  { %v1076_v44 = vpop.f32.mrb[5].mxu0  ;;  %1092 = vmatmul.mubr.msk.f32.gmra.mrb[4].mxu1 %vm176_vm6, %v163_v43 }
 0x17a   :  { %1100 = vmatprep.mubr.msk.f32.mxu1 %vm1280_vm0, %v1281_v18 }
 0x244   :  { %v252_v52 = vpop.f32.mrb[0].mxu1 }
 0x245   :  { %v1087_v53 = vpop.f32.mrb[1].mxu1  ;;  %v253_v54 = vadd.f32 %v980_v51, %v252_v52 }
 0x246   :  { %v802_v53 = vld [vmem:[#allocation2 + $0xf8] sm:$0xff] }
 0x247   :  { %v266_v58 = vmax.f32 %v253_v54, 0.0 }
 0x248   :  { %v257_v55 = vpop.f32.mrb[2].mxu1 }
 0x249   :  { %v258_v56 = vadd.f32 %v980_v51, %v257_v55  ;;  %v1090_v57 = vpop.f32.mrb[3].mxu1 }
 0x24a   :  { %v805_v57 = vld [vmem:[#allocation2 + $0x110] sm:$0xff] }
 0x24b   :  { %v267_v59 = vmax.f32 %v258_v56, 0.0 }
 0x24c   :  { %v262_v60 = vpop.f32.mrb[4].mxu1 }
 0x24d   :  { %v1194_v61 = vpack.c.bf16 %v267_v59, %v266_v58  ;;  %v263_v62 = vadd.f32 %v980_v51, %v262_v60  ;;  %v1093_v63 = vpop.f32.mrb[5].mxu1  ;;  %v885_v59 = vld [vmem:[#allocation2 + $0x120] sm:$0xff]  ;;  %v886_v60 = vld [vmem:[#allocation2 + $0x128] sm:$0xff] }
 0x24f   :  { %1195 = vmatpush3.bf16.msra.mxu1 %v1194_v61  ;;  %v268_v0 = vmax.f32 %v263_v62, 0.0  ;;  %v1224_v61 = vpack.c.bf16 %v886_v60, %v885_v59 }
 0x250   :  { %1098 = vmatprep.subr.mxu1 %v1281_v18 }
 0x253   :  { %1099 = vmatpush3.msk.msra.mxu1 %vm273_vm7, %v268_v0 }
 0x254   :  { %1101 = vmatmul.mubr.msk.f32.vlgmr.msra.gmra.mrb[6].mxu1 %vm269_vm8, %v1357_v2  ;;  %1114 = vmatprep.subr.mxu1 %v1281_v18 }
 0x255   :  { %1116 = vmatprep.mubr.msk.f32.mxu1 %vm1280_vm0, %v1281_v18 }
 0x327   :  { %v343_v3 = vpop.f32.mrb[6].mxu1 }
 0x328   :  { %1112 = vmatmul.mubr.msk.f32.vlgmr.msra.gmra.mrb[6].mxu0 %vm176_vm6, %v343_v3  ;;  %v1102_v4 = vpop.f32.mrb[7].mxu1 }
 0x329   :  { %1131 = vmatprep.mubr.msk.f32.mxu0 %vm1280_vm0, %v1281_v18 }
 0x3fb   :  { %v425_v6 = vpop.f32.mrb[6].mxu0 }
 0x3fc   :  { %v426_v7 = vadd.f32 %v986_v5, %v425_v6  ;;  %v1113_v8 = vpop.f32.mrb[7].mxu0 }
 0x3fd   :  { %v888_v8 = vld [vmem:[#allocation2 + $0x138] sm:$0xff] }
 0x3fe   :  { %1115 = vmatpush3.msk.msra.mxu1 %vm439_vm9, %v426_v7  ;;  %v887_v7 = vld [vmem:[#allocation2 + $0x130] sm:$0xff] }
 0x3ff   :  { %1117 = vmatmul.mubr.msk.f32.vlgmr.msra.gmra.mrb[8].mxu1 %vm429_vm10, %v68_v9  ;;  %1205 = vmatprep.subr.bf16.mxu1 %v1278_v1  ;;  %v1227_v9 = vpack.c.bf16 %v888_v8, %v887_v7 }
 0x400   :  { %1119 = vmatprep.mubr.msk.f32.mxu1 %vm1280_vm0, %v1281_v18  ;;  %1207 = vmatpush3.bf16.msra.mxu1 %v1206_v29 }
 0x401   :  { %1208 = vmatprep.subr.bf16.mxu1 %v1278_v1 }
 0x403   :  { %1120 = vmatmul.mubr.msk.f32.gmra.mrb[10].mxu1 %vm429_vm10, %v69_v10  ;;  %v999_v10 = vld [vmem:[#allocation2 + $0x118] ss:$0 sm:$0xff] }
 0x404   :  { %1122 = vmatprep.mubr.msk.f32.mxu1 %vm1280_vm0, %v1281_v18  ;;  %1210 = vmatpush3.bf16.msra.mxu1 %v1209_v33 }
 0x405   :  { %1217 = vmatprep.subr.bf16.mxu1 %v1278_v1 }
 0x407   :  { %1123 = vmatmul.mubr.msk.f32.gmra.mrb[12].mxu1 %vm429_vm10, %v70_v11 }
 0x408   :  { %1142 = vmatprep.mubr.msk.f32.mxu1 %vm1280_vm0, %v1281_v18 }
 0x4d2   :  { %v509_v12 = vpop.f32.mrb[8].mxu1 }
 0x4d3   :  { %526 = vrot.lane.b32.xlu1 %v509_v12, %s1282_s0  ;;  %v1118_v13 = vpop.f32.mrb[9].mxu1 }
 0x4d6   :  { %v514_v14 = vpop.f32.mrb[10].mxu1 }
 0x4d7   :  { %528 = vrot.lane.b32.xlu0 %v514_v14, %s1282_s0  ;;  %v1121_v15 = vpop.f32.mrb[11].mxu1  ;;  %v1001_v14 = vld [vmem:[#allocation2 + $0x140] ss:$0 sm:$0xff] }
 0x4da   :  { %v519_v16 = vpop.f32.mrb[12].mxu1 }
 0x4db   :  { %530 = vrot.lane.b32.xlu1 %v519_v16, %s1282_s0  ;;  %v1124_v17 = vpop.f32.mrb[13].mxu1 }
 0x545   :  { %v527_v19 = vpop.permute.xlu1 %526 }
 0x546   :  { %v535_v20 = vadd.f32 %v527_v19, %v253_v54  ;;  %v803_v54 = vld [vmem:[#allocation2 + $0x100] sm:$0xff] }
 0x547   :  { %v1218_v55 = vpack.c.bf16 %v803_v54, %v802_v53 }
 0x548   :  { %v538_v23 = vmax.f32 %v535_v20, 0.0 }
 0x549   :  { %v529_v21 = vpop.permute.xlu0 %528 }
 0x54a   :  { %v536_v22 = vadd.f32 %v529_v21, %v258_v56  ;;  %v804_v56 = vld [vmem:[#allocation2 + $0x108] sm:$0xff] }
 0x54b   :  { %v1221_v58 = vpack.c.bf16 %v805_v57, %v804_v56 }
 0x54c   :  { %v539_v24 = vmax.f32 %v536_v22, 0.0 }
 0x54d   :  { %v531_v28 = vpop.permute.xlu1 %530 }
 0x54e   :  { %v1244_v31 = vpack.i.bf16 %v539_v24, %v538_v23  ;;  %v537_v32 = vadd.f32 %v531_v28, %v263_v62  ;;  %v996_v62 = vld [vmem:[#allocation2 + $0xe8] ss:$0 sm:$0xff] }
 0x550   :  { %v540_v34 = vmax.f32 %v537_v32, 0.0  ;;  %1245 = vrot.lane.b32.xlu0 %v1244_v31, %s1283_s4 }
 0x552   :  { %548 = vrot.lane.b32.xlu1 %v540_v34, %s1283_s4 }
 0x554   :  { %714 = vperm.xlu0 %1249, %v710_v48  }
 0x5c2   :  { %v1246_v35 = vpop.permute.xlu0 %1245 }
 0x5c3   :  { %v1248_v36 = vunpack.i.h.bf16 %v1246_v35  ;;  %v1247_v37 = vunpack.i.l.bf16 %v1246_v35 }
 0x5c4   :  { %v549_v39 = vpop.permute.xlu1 %548 }
 0x5c5   :  { %v1203_v38 = vpack.c.bf16 %v1248_v36, %v1247_v37 }
 0x5c7   :  { %1204 = vmatpush3.bf16.msra.mxu0 %v1203_v38 }
 0x5c8   :  { %1129 = vmatprep.subr.mxu0 %v1281_v18 }
 0x5cb   :  { %1130 = vmatpush3.msk.msra.mxu0 %vm273_vm7, %v549_v39 }
 0x5cc   :  { %1132 = vmatmul.mubr.msk.f32.vlgmr.msra.gmra.mrb[8].mxu0 %vm269_vm8, %v1357_v2  ;;  %1211 = vmatprep.subr.bf16.mxu0 %v1278_v1  ;;  %v998_v2 = vld [vmem:[#allocation2 + $0xf0] ss:$0 sm:$0xff] }
 0x5cd   :  { %1153 = vmatprep.mubr.msk.f32.mxu0 %vm1280_vm0, %v1281_v18  ;;  %1213 = vmatpush3.bf16.msra.mxu0 %v1212_v42 }
 0x5ce   :  { %1214 = vmatprep.subr.bf16.mxu0 %v1278_v1 }
 0x5d1   :  { %1216 = vmatpush3.bf16.msra.mxu0 %v1215_v47 }
 0x5d2   :  { %1223 = vmatprep.subr.bf16.mxu0 %v1278_v1 }
 0x5d3   :  { %v715_v63 = vpop.permute.xlu0 %714 }
 0x5d4   :  { %v721_v0 = vmul.f32 %v996_v62, %v715_v63 }
 0x69f   :  { %v620_v43 = vpop.f32.mrb[8].mxu0 }
 0x6a0   :  { %v1133_v44 = vpop.f32.mrb[9].mxu0  ;;  %1143 = vmatmul.mubr.msk.f32.vlgmr.msra.gmra.mrb[14].mxu1 %vm176_vm6, %v620_v43 }
 0x6a1   :  { %1164 = vmatprep.mubr.msk.f32.mxu1 %vm1280_vm0, %v1281_v18  ;;  %1219 = vmatpush3.bf16.msra.mxu1 %v1218_v55 }
 0x6a2   :  { %1220 = vmatprep.subr.bf16.mxu1 %v1278_v1 }
 0x6a5   :  { %1222 = vmatpush3.bf16.msra.mxu1 %v1221_v58 }
 0x773   :  { %v702_v50 = vpop.f32.mrb[14].mxu1 }
 0x774   :  { %v703_v51 = vadd.f32 %v994_v49, %v702_v50  ;;  %v1144_v52 = vpop.f32.mrb[15].mxu1 }
 0x776   :  { %1154 = vmatmul.mubr.msk.f32.vlgmr.msra.gmra.mrb[10].mxu0 %vm176_vm6, %v703_v51 }
 0x777   :  { %1175 = vmatprep.mubr.msk.f32.mxu0 %vm1280_vm0, %v1281_v18  ;;  %1225 = vmatpush3.bf16.msra.mxu0 %v1224_v61 }
 0x778   :  { %1226 = vmatprep.subr.bf16.mxu0 %v1278_v1 }
 0x77b   :  { %1228 = vmatpush3.bf16.msra.mxu0 %v1227_v9 }
 0x849   :  { %v791_v18 = vpop.f32.mrb[10].mxu0 }
 0x84a   :  { %v792_v3 = vadd.f32 %v791_v18, %v721_v0  ;;  %v1155_v4 = vpop.f32.mrb[11].mxu0 }
 0x84c   :  { %v800_v5 = vadd.f32 %v998_v2, %v792_v3 }
 0x84e   :  { %v801_v6 = vmax.f32 %v800_v5, 0.0 }
 0x850   :  { %1165 = vmatmul.mubr.msk.f32.vlgmr.msra.gmra.mrb[16].mxu1 %vm176_vm6, %v801_v6 }
 0x923   :  { %v880_v11 = vpop.f32.mrb[16].mxu1 }
 0x924   :  { %v881_v12 = vadd.f32 %v999_v10, %v880_v11  ;;  %v1166_v13 = vpop.f32.mrb[17].mxu1 }
 0x926   :  { %v884_v1 = vmax.f32 %v881_v12, 0.0 }
 0x928   :  { %1176 = vmatmul.mubr.msk.f32.vlgmr.msra.gmra.mrb[12].mxu0 %vm176_vm6, %v884_v1 }
 0x9fb   :  { %v963_v15 = vpop.f32.mrb[12].mxu0 }
 0x9fc   :  { %v964_v16 = vadd.f32 %v1001_v14, %v963_v15  ;;  %v1177_v17 = vpop.f32.mrb[13].mxu0 }
 0x9fe   :  { %968 = vst.msk [vmem:[%s1405_s3] sm:$0x3] %vm967_vm11, %v964_v16 }
 0x9ff   :  { %973 = vsyncpa [#allocation3], 1 }

</bundles_post_ra>
